<compile_context>
chip_gen: v7x
topology: tpu7x:2x2x1
jax: 0.10.0
libtpu: 0.0.40
codegen_flags: <defaults>
</compile_context>

<pallas_src>
import jax
import jax.numpy as jnp
from jax.experimental import pallas as pl
from jax.experimental.pallas import tpu as pltpu


def _round_up(n, m):
    return ((n + m - 1) // m) * m


def ann_kernel(x_ref, w1_ref, b1_ref, w2_ref, b2_ref, o_ref):
    # Layer 1: fold the transpose into the matmul.
    #   x_ref : [TILE_B, F]  (untransposed, contiguous rows)
    #   w1_ref: [H, F]
    #   h     : [H, TILE_B]  (batch on lanes -> lane-dense from here on)
    h = jax.lax.dot_general(
        w1_ref[...], x_ref[...],
        dimension_numbers=(((1,), (1,)), ((), ())),   # contract both F axes
        preferred_element_type=jnp.float32,
    )
    h = h + b1_ref[...]                        # [H, 1] broadcast along lanes

    # Sigmoid via single-EUP tanh form (1 transcendental/elem vs exp + recip).
    h = 0.5 * (jnp.tanh(0.5 * h) + 1.0)

    # Layer 2 (32 -> 1): VPU multiply + XLU sublane reduce (no degenerate
    # M=1/N=1 MXU matmul).
    y = jnp.sum(h * w2_ref[...], axis=0, keepdims=True)    # [1, TILE_B]
    y = y + b2_ref[0, 0]                       # SMEM scalar bias

    # On the ragged last batch block the invalid lanes carry garbage through
    # tanh/exp -- harmless on TPU (no traps) and masked on the store.
    o_ref[...] = jnp.exp(y)                    # lane-dense [1, TILE_B] store


def ann_forward(x, w1, b1, w2, b2, *, tile_b=16384):
    """Forward pass.

    x : [B, F] f32
    w1: [H, F] f32  (PyTorch fully1.weight layout)
    b1: [H, 1] f32
    w2: [H, 1] f32  (transposed fully2.weight)
    b2: [1, 1] f32
    returns [B, 1] f32
    """
    B, F = x.shape
    H = w1.shape[0]

    # Batch tile on lanes (multiple of 128).  Keep >= 2 grid steps when the
    # batch allows it (v7x megacore), and cap at the default so the lane-padded
    # [tile_b, F] x buffers (~tile_b * 512 B each, double-buffered) stay well
    # inside v7x's 64 MiB VMEM.  Raise tile_b to 32K+ on v5e/v6e if desired.
    half_b = _round_up(pl.cdiv(_round_up(max(B, 1), 128), 2), 128)
    tile_b = max(128, min(tile_b, half_b))

    grid = (pl.cdiv(B, tile_b),)

    cost = pl.CostEstimate(
        flops=2 * B * F * H + 2 * B * H,
        transcendentals=B * H + B,
        bytes_accessed=4 * (B * F + B + H * F + 2 * H + 1),
    )

    out = pl.pallas_call(
        ann_kernel,
        out_shape=jax.ShapeDtypeStruct((1, B), jnp.float32),
        grid=grid,
        in_specs=[
            # x untransposed & unpadded: contiguous [tile_b, F] row blocks,
            # auto double-buffered; ragged last block handled by Pallas.
            pl.BlockSpec((tile_b, F), lambda i: (i, 0)),
            # Weights / biases: resident across the whole grid.
            pl.BlockSpec((H, F), lambda i: (0, 0)),
            pl.BlockSpec((H, 1), lambda i: (0, 0)),
            pl.BlockSpec((H, 1), lambda i: (0, 0)),
            # b2: scalar in SMEM (no (8,128) VMEM tile / DMA per step).
            pl.BlockSpec(memory_space=pltpu.MemorySpace.SMEM),
        ],
        out_specs=pl.BlockSpec((1, tile_b), lambda i: (0, i)),
        compiler_params=pltpu.CompilerParams(
            dimension_semantics=("parallel",),      # v7x: shard batch over TCs
            vmem_limit_bytes=48 * 1024 * 1024,      # safe on v5e/v6e/v7x
        ),
        cost_estimate=cost,
    )(x, w1, b1, w2, b2)

    # (1, B) -> (B, 1): identical linear layout, free reshape.
    return out.reshape(B, 1)


def init_params(key, in_features, hidden=32):
    """nn.Linear-style init: U(-1/sqrt(fan_in), 1/sqrt(fan_in))."""
    k1, k2, k3, k4 = jax.random.split(key, 4)
    bound1 = 1.0 / jnp.sqrt(jnp.float32(in_features))
    bound2 = 1.0 / jnp.sqrt(jnp.float32(hidden))
    w1 = jax.random.uniform(k1, (hidden, in_features), jnp.float32, -bound1, bound1)
    b1 = jax.random.uniform(k2, (hidden, 1), jnp.float32, -bound1, bound1)
    w2 = jax.random.uniform(k3, (hidden, 1), jnp.float32, -bound2, bound2)
    b2 = jax.random.uniform(k4, (1, 1), jnp.float32, -bound2, bound2)
    return w1, b1, w2, b2


if __name__ == "__main__":
    key = jax.random.PRNGKey(0)
    kx, kp = jax.random.split(key)

    # Small shapes; B=300 exercises the ragged last block and a 2-step grid.
    batch, in_features, hidden = 300, 16, 32
    x = jax.random.normal(kx, (batch, in_features), jnp.float32)
    w1, b1, w2, b2 = init_params(kp, in_features, hidden)

    out = ann_forward(x, w1, b1, w2, b2)
    out = jax.block_until_ready(out)

    # Pure-JAX reference (same math / same param layout).
    ref = jnp.exp(jax.nn.sigmoid(x @ w1.T + b1[:, 0]) @ w2 + b2[0, 0])

    assert out.shape == (batch, 1)
    assert jnp.allclose(out, ref, rtol=1e-5, atol=1e-5)

    print("KERNEL_OK")
</pallas_src>

<mosaic_0001>
module attributes {stable_mosaic.version = 11 : i64} {
  func.func @ann_kernel(%arg0: i32, %arg1: memref<256x16xf32, #tpu.memory_space<vmem>>, %arg2: memref<32x16xf32, #tpu.memory_space<vmem>>, %arg3: memref<32x1xf32, #tpu.memory_space<vmem>>, %arg4: memref<32x1xf32, #tpu.memory_space<vmem>>, %arg5: memref<1x1xf32, #tpu.memory_space<smem>>, %arg6: memref<1x256xf32, #tpu.memory_space<vmem>>) attributes {dimension_semantics = [#tpu.dimension_semantics<parallel>], iteration_bounds = array<i64: 2>, scalar_prefetch = 0 : i64, scratch_operands = 0 : i64, tpu.core_type = #tpu.core_type<tc>, window_params = [{transform_indices = @transform_0, window_bounds = array<i64: 256, 16>}, {pipeline_mode = #tpu.pipeline_mode<synchronous>, transform_indices = @transform_1, window_bounds = array<i64: 32, 16>}, {pipeline_mode = #tpu.pipeline_mode<synchronous>, transform_indices = @transform_2, window_bounds = array<i64: 32, 1>}, {pipeline_mode = #tpu.pipeline_mode<synchronous>, transform_indices = @transform_3, window_bounds = array<i64: 32, 1>}, {transform_indices = @transform_4, window_bounds = array<i64: 1, 1>}, {transform_indices = @transform_5, window_bounds = array<i64: 1, 256>}]} {
    %c0 = arith.constant 0 : index
    %c0_0 = arith.constant 0 : index
    %0 = vector.load %arg2[%c0, %c0_0] : memref<32x16xf32, #tpu.memory_space<vmem>>, vector<32x16xf32>
    %c0_1 = arith.constant 0 : index
    %c0_2 = arith.constant 0 : index
    %1 = vector.load %arg1[%c0_1, %c0_2] : memref<256x16xf32, #tpu.memory_space<vmem>>, vector<256x16xf32>
    %cst = arith.constant dense<0.000000e+00> : vector<32x256xf32>
    %2 = tpu.matmul %0, %1, %cst {dimension_numbers = #tpu.dot_dimension_numbers<[1], [1], [0], [0], [0, 0, 1, 0], [], []>} : vector<32x16xf32>, vector<256x16xf32>, vector<32x256xf32> -> vector<32x256xf32>
    %c0_3 = arith.constant 0 : index
    %c0_4 = arith.constant 0 : index
    %3 = vector.load %arg3[%c0_3, %c0_4] : memref<32x1xf32, #tpu.memory_space<vmem>>, vector<32x1xf32>
    %4 = vector.broadcast %3 : vector<32x1xf32> to vector<32x256xf32>
    %5 = arith.addf %2, %4 : vector<32x256xf32>
    %cst_5 = arith.constant 5.000000e-01 : f32
    %6 = vector.broadcast %cst_5 : f32 to vector<32x256xf32>
    %7 = arith.mulf %6, %5 : vector<32x256xf32>
    %8 = math.tanh %7 : vector<32x256xf32>
    %cst_6 = arith.constant 1.000000e+00 : f32
    %9 = vector.broadcast %cst_6 : f32 to vector<32x256xf32>
    %10 = arith.addf %8, %9 : vector<32x256xf32>
    %cst_7 = arith.constant 5.000000e-01 : f32
    %11 = vector.broadcast %cst_7 : f32 to vector<32x256xf32>
    %12 = arith.mulf %11, %10 : vector<32x256xf32>
    %c0_8 = arith.constant 0 : index
    %c0_9 = arith.constant 0 : index
    %13 = vector.load %arg4[%c0_8, %c0_9] : memref<32x1xf32, #tpu.memory_space<vmem>>, vector<32x1xf32>
    %14 = vector.broadcast %13 : vector<32x1xf32> to vector<32x256xf32>
    %15 = arith.mulf %12, %14 : vector<32x256xf32>
    %cst_10 = arith.constant dense<0.000000e+00> : vector<256xf32>
    %16 = vector.multi_reduction <add>, %15, %cst_10 [0] : vector<32x256xf32> to vector<256xf32>
    %17 = vector.shape_cast %16 : vector<256xf32> to vector<1x256xf32>
    %c0_11 = arith.constant 0 : index
    %c0_12 = arith.constant 0 : index
    %18 = memref.load %arg5[%c0_11, %c0_12] : memref<1x1xf32, #tpu.memory_space<smem>>
    %19 = vector.broadcast %18 : f32 to vector<1x256xf32>
    %20 = arith.addf %17, %19 : vector<1x256xf32>
    %21 = math.exp %20 : vector<1x256xf32>
    %c0_13 = arith.constant 0 : index
    %c0_14 = arith.constant 0 : index
    %22 = vector.load %arg6[%c0_13, %c0_14] : memref<1x256xf32, #tpu.memory_space<vmem>>, vector<1x256xf32>
    tpu.vector_store %arg6[%c0_13, %c0_14], %21 {strides = array<i32>} : memref<1x256xf32, #tpu.memory_space<vmem>>, vector<1x256xf32>,
    return
  }
  func.func @transform_0(%arg0: i32) -> (i32, i32) {
    %c0_i32 = arith.constant 0 : i32
    %c0_i32_0 = arith.constant 0 : i32
    return %arg0, %c0_i32 : i32, i32
  }
  func.func @transform_1(%arg0: i32) -> (i32, i32) {
    %c0_i32 = arith.constant 0 : i32
    %c0_i32_0 = arith.constant 0 : i32
    %c0_i32_1 = arith.constant 0 : i32
    return %c0_i32, %c0_i32_0 : i32, i32
  }
  func.func @transform_2(%arg0: i32) -> (i32, i32) {
    %c0_i32 = arith.constant 0 : i32
    %c0_i32_0 = arith.constant 0 : i32
    %c0_i32_1 = arith.constant 0 : i32
    return %c0_i32, %c0_i32_0 : i32, i32
  }
  func.func @transform_3(%arg0: i32) -> (i32, i32) {
    %c0_i32 = arith.constant 0 : i32
    %c0_i32_0 = arith.constant 0 : i32
    %c0_i32_1 = arith.constant 0 : i32
    return %c0_i32, %c0_i32_0 : i32, i32
  }
  func.func @transform_4(%arg0: i32) -> (i32, i32) {
    %c0_i32 = arith.constant 0 : i32
    %c0_i32_0 = arith.constant 0 : i32
    %c0_i32_1 = arith.constant 0 : i32
    return %c0_i32, %c0_i32_0 : i32, i32
  }
  func.func @transform_5(%arg0: i32) -> (i32, i32) {
    %c0_i32 = arith.constant 0 : i32
    %c0_i32_0 = arith.constant 0 : i32
    return %c0_i32, %arg0 : i32, i32
  }
}

</mosaic_0001>

<bundles_post_ra>
// kernel: tpu_custom_call.1
= control target key start
LH: loop header
LB: loop body
LE: loop exit
PB: predicated region body
PF: predicated region fallthrough
CT: control target
= control target key end

     0   :  { %s1289_s0 = inlined_call_operand.vmem [shape: f32[300,16], index: 0, kind: input, shape index: {}]   ;;  %s1290_s1 = inlined_call_operand.vmem [shape: f32[32,16], index: 1, kind: input, shape index: {}]   ;;  %s1291_s2 = inlined_call_operand.vmem [shape: f32[32,1], index: 2, kind: input, shape index: {}]   ;;  %s1292_s3 = inlined_call_operand.vmem [shape: f32[32,1], index: 3, kind: input, shape index: {}]   ;;  %s1293_s4 = inlined_call_operand.<no memory space> [shape: f32[1,1], index: 4, kind: input, shape index: {}]   ;;  %s1294_s5 = inlined_call_operand.hbm [shape: f32[1,300], index: 5, kind: output, shape index: {}]  }
   0x1   :  { %10 = sst [smem:[#allocation2]] %s1293_s4 }
   0x2   :  { %11 = vsyncpa [#allocation4], 0 }
   0x3   :  { %13 = vsyncpa [#allocation4 + $0x1], 0  ;;  %s1018_s20 = smov 0   ;;  %s1020_s21 = smov 0  }
   0x4   :  { %s1022_s22 = smov 0   ;;  %s1024_s23 = smov 0  }
   0x5 LB: > { %s1039_s4 = sadd.s32 4294967295, %s980_s23   ;;  %s701_s24 = sadd.s32 4294967294, %s980_s23   ;;  %s980_s23 = sphi %s1024_s23, %s1302_s23   ;;  %s976_s22 = sphi %s1022_s22, %s1301_s22   ;;  %s972_s21 = sphi %s1020_s21, %s1300_s21   ;;  %s968_s20 = sphi %s1018_s20, %s1299_s20  }
   0x6   : > { %s1043_s25 = sadd.s32 1, %s980_s23   ;;  %s136_s26 = sadd.s32 1, %s976_s22 }
   0x7   : > { %s133_s27 = ssub.s32 %s980_s23, %s1043_s25  ;;  %p146_p0 = scmp.ne.s32.totalorder %s976_s22, %s972_s21 }
   0x8   : > { %p134_p1 = scmp.eq.s32.totalorder %s133_s27, 0  ;;  %p147_p2 = scmp.eq.s32.totalorder %s1039_s4, 1 }
   0x9   : > { %p152_p3 = scmp.ne.s32.totalorder %s972_s21, %s968_s20  ;;  %p153_p4 = scmp.eq.s32.totalorder %s701_s24, 1 }
   0xa   : > { %s1054_s28 = scalar_select %p134_p1, %s976_s22, %s136_s26  }
   0xb   : > { %p1056_p5 = por %p147_p2, %p146_p0  ;;  %p1060_p6 = por %p153_p4, %p152_p3 }
   0xc   : > { %p704_p7 = scmp.ge.s32.totalorder %s980_s23, 1  ;;  %p200_p8 = scmp.lt.s32.totalorder %s980_s23, 3 }
   0xe   : > { %p201_p9 = pnand %p704_p7, %p200_p8 }
   0xf   : > { %s1067_s6 = sshll.u32 (!%p201_p9), %s1039_s4, 5  ;;  %vm311_vm0 = vcmask (!%p201_p9), 130048   ;;  %v1072_v0 = vld [vmem:[%s1290_s1] sm:$0xff] (!%p201_p9)  ;;  %v1077_v1 = vld [vmem:[%s1290_s1 + $0x10] sm:$0xff] (!%p201_p9)  ;;  %v982_v3 = vmov (!%p201_p9), 0   ;;  %v288_v5 = vld [vmem:[%s1291_s2 + $0x8] sm:$0xff] (!%p201_p9) }
  0x10   : > { %204 = sbr.rel (%p201_p9) target bundleno = 400 (0x190), region = 40  ;;  %p237_p10 = scmp.lt.s32.totalorder (!%p201_p9), %s1067_s6, 37  ;;  %784 = vmatprep.mubr.msk.f32.mxu0 (!%p201_p9), %vm311_vm0, %v1072_v0  ;;  %788 = vmatprep.mubr.msk.f32.mxu1 (!%p201_p9), %vm311_vm0, %v1077_v1  ;;  %v287_v2 = vld [vmem:[%s1291_s2] sm:$0xff] (!%p201_p9)  ;;  %v289_v4 = vld [vmem:[%s1291_s2 + $0x10] sm:$0xff] (!%p201_p9)  ;;  %v290_v6 = vld [vmem:[%s1291_s2 + $0x18] sm:$0xff] (!%p201_p9) }
  0x11   : > { %896 = vset.pattern.permute.xlu0 (!%p201_p9), %v982_v3  ;;  %897 = vset.pattern.permute.xlu1 (!%p201_p9), %v982_v3  ;;  %vm1104_vm1 = vmpackc.low (!%p201_p9), %vm311_vm0, %vm311_vm0  ;;  %v541_v17 = vld [vmem:[%s1292_s3] sm:$0xff] (!%p201_p9)  ;;  %v542_v18 = vld [vmem:[%s1292_s3 + $0x8] sm:$0xff] (!%p201_p9)  ;;  %s591_s26 = sld [smem:[#allocation2]] (!%p201_p9) }
  0x12   : > { %293 = vperm.xlu0 (!%p201_p9), %896, %v287_v2   ;;  %303 = vperm.xlu1 (!%p201_p9), %897, %v289_v4   ;;  %v543_v23 = vld [vmem:[%s1292_s3 + $0x10] sm:$0xff] (!%p201_p9)  ;;  %v544_v24 = vld [vmem:[%s1292_s3 + $0x18] sm:$0xff] (!%p201_p9)  ;;  %v252_v60 = vld [vmem:[%s1290_s1 + $0x8] sm:$0xff] (!%p201_p9) }
  0x13   : > { %v254_v61 = vld [vmem:[%s1290_s1 + $0x18] sm:$0xff] (!%p201_p9) }
  0x16   : > { %298 = vperm.xlu0 (!%p201_p9), %896, %v288_v5   ;;  %308 = vperm.xlu1 (!%p201_p9), %897, %v290_v6  }
  0x17   : > { %s238_s15 = scalar_select %p237_p10, %s1067_s6, 37 }
  0x18   : > { %s745_s9 = sshll.u32 (%p1056_p5), %s1039_s4, 1 }
  0x19   : > { %s707_s24 = sshll.u32 %s238_s15, 3  ;;  %s631_s10 = ssub.s32 (%p1056_p5), 3, %s745_s9 }
  0x1a   : > { %s1100_s7 = scalar_lea.vmem %s1289_s0, %s707_s24  ;;  %547 = vperm.xlu0 %896, %v541_v17   ;;  %552 = vperm.xlu1 %897, %v542_v18   ;;  %s229_s24 = sand.u32 1, %s972_s21  }
  0x1b   : > { %v271_v8 = vld [vmem:[%s1100_s7 + $0x80] sm:$0xff]  ;;  %v272_v9 = vld [vmem:[%s1100_s7 + $0x88] sm:$0xff]  ;;  %v273_v13 = vld [vmem:[%s1100_s7 + $0x90] sm:$0xff]  ;;  %s705_s27 = sshll.u32 %s229_s24, 1  ;;  %s1235_s8 = scalar_lea.sflag [#allocation4], %s229_s24 }
  0x1c   : > { %v255_v10 = vld [vmem:[%s1100_s7] sm:$0xff]  ;;  %v792_v11 = vpack.c.bf16 %v272_v9, %v271_v8  ;;  %v256_v12 = vld [vmem:[%s1100_s7 + $0x8] sm:$0xff]  ;;  %v274_v14 = vld [vmem:[%s1100_s7 + $0x98] sm:$0xff]  ;;  %p632_p11 = scmp.lt.s32.totalorder (%p1056_p5), %s631_s10, 2 }
  0x1d   : > { %v795_v15 = vpack.c.bf16 %v256_v12, %v255_v10  ;;  %v798_v16 = vpack.c.bf16 %v274_v14, %v273_v13  ;;  %v257_v19 = vld [vmem:[%s1100_s7 + $0x10] sm:$0xff]  ;;  %v258_v20 = vld [vmem:[%s1100_s7 + $0x18] sm:$0xff]  ;;  %v275_v21 = vld [vmem:[%s1100_s7 + $0xa0] sm:$0xff] }
  0x1e   : > { %794 = vmatprep.subr.msk.bf16.mxu0 %vm1104_vm1, %v792_v11  ;;  %840 = vmatprep.subr.msk.bf16.mxu1 %vm1104_vm1, %v792_v11  ;;  %v276_v22 = vld [vmem:[%s1100_s7 + $0xa8] sm:$0xff]  ;;  %v801_v25 = vpack.c.bf16 %v258_v20, %v257_v19  ;;  %v259_v27 = vld [vmem:[%s1100_s7 + $0x20] sm:$0xff]  ;;  %v277_v29 = vld [vmem:[%s1100_s7 + $0xb0] sm:$0xff] }
  0x1f   : > { %797 = vmatpush3.bf16.xpose.msk.msra.mxu0 %vm1104_vm1, %v795_v15  ;;  %848 = vmatpush3.bf16.xpose.msk.msra.mxu1 %vm1104_vm1, %v795_v15  ;;  %v804_v26 = vpack.c.bf16 %v276_v22, %v275_v21  ;;  %v260_v28 = vld [vmem:[%s1100_s7 + $0x28] sm:$0xff]  ;;  %v278_v30 = vld [vmem:[%s1100_s7 + $0xb8] sm:$0xff]  ;;  %v261_v33 = vld [vmem:[%s1100_s7 + $0x30] sm:$0xff] }
  0x20   : > { %800 = vmatprep.subr.msk.bf16.mxu0 %vm1104_vm1, %v798_v16  ;;  %841 = vmatprep.subr.msk.bf16.mxu1 %vm1104_vm1, %v798_v16  ;;  %v807_v31 = vpack.c.bf16 %v260_v28, %v259_v27  ;;  %v810_v32 = vpack.c.bf16 %v278_v30, %v277_v29  ;;  %v262_v34 = vld [vmem:[%s1100_s7 + $0x38] sm:$0xff]  ;;  %v279_v35 = vld [vmem:[%s1100_s7 + $0xc0] sm:$0xff]  ;;  %v280_v36 = vld [vmem:[%s1100_s7 + $0xc8] sm:$0xff] }
  0x21   : > { %557 = vperm.xlu0 %896, %v543_v23   ;;  %562 = vperm.xlu1 %897, %v544_v24   ;;  %v813_v37 = vpack.c.bf16 %v262_v34, %v261_v33  ;;  %v816_v38 = vpack.c.bf16 %v280_v36, %v279_v35  ;;  %v263_v39 = vld [vmem:[%s1100_s7 + $0x40] sm:$0xff]  ;;  %v264_v40 = vld [vmem:[%s1100_s7 + $0x48] sm:$0xff]  ;;  %v281_v41 = vld [vmem:[%s1100_s7 + $0xd0] sm:$0xff] }
  0x22   : > { %v282_v42 = vld [vmem:[%s1100_s7 + $0xd8] sm:$0xff]  ;;  %v819_v43 = vpack.c.bf16 %v264_v40, %v263_v39  ;;  %v265_v45 = vld [vmem:[%s1100_s7 + $0x50] sm:$0xff]  ;;  %v283_v47 = vld [vmem:[%s1100_s7 + $0xe0] sm:$0xff] }
  0x23   : > { %v822_v44 = vpack.c.bf16 %v282_v42, %v281_v41  ;;  %v266_v46 = vld [vmem:[%s1100_s7 + $0x58] sm:$0xff]  ;;  %v284_v48 = vld [vmem:[%s1100_s7 + $0xe8] sm:$0xff]  ;;  %v267_v51 = vld [vmem:[%s1100_s7 + $0x60] sm:$0xff] }
  0x24   : > { %v825_v49 = vpack.c.bf16 %v266_v46, %v265_v45  ;;  %v828_v50 = vpack.c.bf16 %v284_v48, %v283_v47  ;;  %v268_v52 = vld [vmem:[%s1100_s7 + $0x68] sm:$0xff]  ;;  %v285_v53 = vld [vmem:[%s1100_s7 + $0xf0] sm:$0xff]  ;;  %v286_v54 = vld [vmem:[%s1100_s7 + $0xf8] sm:$0xff] }
  0x25   : > { %v831_v55 = vpack.c.bf16 %v268_v52, %v267_v51  ;;  %v834_v56 = vpack.c.bf16 %v286_v54, %v285_v53  ;;  %v269_v57 = vld [vmem:[%s1100_s7 + $0x70] sm:$0xff]  ;;  %v270_v58 = vld [vmem:[%s1100_s7 + $0x78] sm:$0xff]  ;;  %s231_s7 = scalar_lea.vmem [#allocation3], %s705_s27 }
  0x26   : > { %v837_v59 = vpack.c.bf16 %v270_v58, %v269_v57 }
  0x27   : > { %803 = vmatpush3.bf16.xpose.msk.msra.mxu0 %vm1104_vm1, %v801_v25  ;;  %849 = vmatpush3.bf16.xpose.msk.msra.mxu1 %vm1104_vm1, %v801_v25 }
  0x28   : > { %806 = vmatprep.subr.msk.bf16.mxu0 %vm1104_vm1, %v804_v26  ;;  %842 = vmatprep.subr.msk.bf16.mxu1 %vm1104_vm1, %v804_v26 }
  0x2f   : > { %809 = vmatpush3.bf16.xpose.msk.msra.mxu0 %vm1104_vm1, %v807_v31  ;;  %850 = vmatpush3.bf16.xpose.msk.msra.mxu1 %vm1104_vm1, %v807_v31 }
  0x30   : > { %812 = vmatprep.subr.msk.bf16.mxu0 %vm1104_vm1, %v810_v32  ;;  %843 = vmatprep.subr.msk.bf16.mxu1 %vm1104_vm1, %v810_v32 }
  0x37   : > { %815 = vmatpush3.bf16.xpose.msk.msra.mxu0 %vm1104_vm1, %v813_v37  ;;  %851 = vmatpush3.bf16.xpose.msk.msra.mxu1 %vm1104_vm1, %v813_v37 }
  0x38   : > { %818 = vmatprep.subr.msk.bf16.mxu0 %vm1104_vm1, %v816_v38  ;;  %844 = vmatprep.subr.msk.bf16.mxu1 %vm1104_vm1, %v816_v38 }
  0x3f   : > { %821 = vmatpush3.bf16.xpose.msk.msra.mxu0 %vm1104_vm1, %v819_v43  ;;  %852 = vmatpush3.bf16.xpose.msk.msra.mxu1 %vm1104_vm1, %v819_v43 }
  0x40   : > { %824 = vmatprep.subr.msk.bf16.mxu0 %vm1104_vm1, %v822_v44  ;;  %845 = vmatprep.subr.msk.bf16.mxu1 %vm1104_vm1, %v822_v44 }
  0x47   : > { %827 = vmatpush3.bf16.xpose.msk.msra.mxu0 %vm1104_vm1, %v825_v49  ;;  %853 = vmatpush3.bf16.xpose.msk.msra.mxu1 %vm1104_vm1, %v825_v49 }
  0x48   : > { %830 = vmatprep.subr.msk.bf16.mxu0 %vm1104_vm1, %v828_v50  ;;  %846 = vmatprep.subr.msk.bf16.mxu1 %vm1104_vm1, %v828_v50 }
  0x4f   : > { %833 = vmatpush3.bf16.xpose.msk.msra.mxu0 %vm1104_vm1, %v831_v55  ;;  %854 = vmatpush3.bf16.xpose.msk.msra.mxu1 %vm1104_vm1, %v831_v55 }
  0x50   : > { %836 = vmatprep.subr.msk.bf16.mxu0 %vm1104_vm1, %v834_v56  ;;  %847 = vmatprep.subr.msk.bf16.mxu1 %vm1104_vm1, %v834_v56 }
  0x57   : > { %839 = vmatpush3.bf16.xpose.msk.msra.mxu0 %vm1104_vm1, %v837_v59  ;;  %855 = vmatpush3.bf16.xpose.msk.msra.mxu1 %vm1104_vm1, %v837_v59 }
  0x5e   : > { %785 = vmatmul.mubr.msk.f32.vlgmr.msra.gmra.mrb[0].mxu0 %vm311_vm0, %v1072_v0  ;;  %789 = vmatmul.mubr.msk.f32.vlgmr.msra.gmra.mrb[0].mxu1 %vm311_vm0, %v1077_v1 }
  0x5f   : > { %786 = vmatprep.mubr.msk.f32.mxu0 %vm311_vm0, %v252_v60  ;;  %790 = vmatprep.mubr.msk.f32.mxu1 %vm311_vm0, %v254_v61 }
  0x62   : > { %787 = vmatmul.mubr.msk.f32.gmra.mrb[2].mxu0 %vm311_vm0, %v252_v60  ;;  %791 = vmatmul.mubr.msk.f32.gmra.mrb[2].mxu1 %vm311_vm0, %v254_v61 }
  0x91   : > { %v294_v62 = vpop.permute.xlu0 %293  ;;  %v304_v63 = vpop.permute.xlu1 %303 }
  0x95   : > { %v299_v1 = vpop.permute.xlu0 %298  ;;  %v309_v9 = vpop.permute.xlu1 %308 }
  0x99   : > { %v548_v32 = vpop.permute.xlu0 %547  ;;  %v553_v40 = vpop.permute.xlu1 %552 }
  0xa0   : > { %v558_v49 = vpop.permute.xlu0 %557  ;;  %v563_v59 = vpop.permute.xlu1 %562 }
 0x131   : > { %v486_v2 = vpop.f32.mrb[0].mxu0  ;;  %v498_v3 = vpop.f32.mrb[0].mxu1 }
 0x132   : > { %v487_v4 = vadd.f32 %v486_v2, %v294_v62  ;;  %v499_v5 = vadd.f32 %v498_v3, %v304_v63  ;;  %v488_v6 = vpop.f32.mrb[1].mxu0  ;;  %v500_v0 = vpop.f32.mrb[1].mxu1 }
 0x133   : > { %v489_v7 = vadd.f32 %v488_v6, %v294_v62  ;;  %v501_v8 = vadd.f32 %v500_v0, %v304_v63 }
 0x134   : > { %v509_v10 = vmul.f32 0.5, %v487_v4  ;;  %v513_v11 = vmul.f32 0.5, %v499_v5 }
 0x135   : > { %v510_v12 = vmul.f32 0.5, %v489_v7  ;;  %v514_v13 = vmul.f32 0.5, %v501_v8  ;;  %v492_v14 = vpop.f32.mrb[2].mxu0  ;;  %v504_v15 = vpop.f32.mrb[2].mxu1 }
 0x136   : > { %898 = vtanh.f32 %v509_v10  ;;  %v493_v16 = vadd.f32 %v492_v14, %v299_v1  ;;  %v505_v17 = vadd.f32 %v504_v15, %v309_v9  ;;  %v494_v18 = vpop.f32.mrb[3].mxu0  ;;  %v506_v19 = vpop.f32.mrb[3].mxu1 }
 0x137   : > { %900 = vtanh.f32 %v513_v11  ;;  %v495_v20 = vadd.f32 %v494_v18, %v299_v1  ;;  %v507_v21 = vadd.f32 %v506_v19, %v309_v9 }
 0x138   : > { %902 = vtanh.f32 %v510_v12  ;;  %v511_v22 = vmul.f32 0.5, %v493_v16  ;;  %v515_v23 = vmul.f32 0.5, %v505_v17 }
 0x139   : > { %904 = vtanh.f32 %v514_v13  ;;  %v512_v24 = vmul.f32 0.5, %v495_v20  ;;  %v516_v25 = vmul.f32 0.5, %v507_v21  ;;  %v592_v13 = vstv %s591_s26 }
 0x13a   : > { %906 = vtanh.f32 %v511_v22  ;;  %v983_v21 = vmov 1966171168  }
 0x13b   : > { %908 = vtanh.f32 %v515_v23  ;;  %v603_v22 = vunpack.c.l.s4 %v983_v21  ;;  %v605_v23 = vlaneseq }
 0x13c   : > { %910 = vtanh.f32 %v512_v24 }
 0x13d   : > { %912 = vtanh.f32 %v516_v25  ;;  %v604_v24 = vunpack.c.0.s8 %v603_v22  ;;  %v606_v25 = vshrl.u32 %v605_v23, 7  ;;  %vm619_vm2 = vcmp.lt.s32.totalorder %v605_v23, 256 }
 0x140   : > { %v899_v26 = vpop.eup %898 }
 0x141   : > { %v901_v27 = vpop.eup %900  ;;  %v525_v28 = vadd.f32 1.0, %v899_v26 }
 0x142   : > { %v903_v29 = vpop.eup %902  ;;  %v529_v30 = vadd.f32 1.0, %v901_v27  ;;  %v607_v27 = vsub.s32 %v604_v24, %v606_v25 }
 0x143   : > { %v905_v31 = vpop.eup %904  ;;  %v526_v33 = vadd.f32 1.0, %v903_v29  ;;  %v533_v35 = vmul.f32 0.5, %v525_v28 }
 0x144   : > { %v907_v34 = vpop.eup %906  ;;  %v530_v37 = vadd.f32 1.0, %v905_v31  ;;  %v537_v41 = vmul.f32 0.5, %v529_v30 }
 0x145   : > { %v909_v36 = vpop.eup %908  ;;  %v527_v38 = vadd.f32 1.0, %v907_v34  ;;  %v534_v44 = vmul.f32 0.5, %v526_v33  ;;  %v565_v47 = vmul.f32 %v548_v32, %v533_v35 }
 0x146   : > { %v911_v39 = vpop.eup %910  ;;  %v531_v42 = vadd.f32 1.0, %v909_v36  ;;  %v538_v50 = vmul.f32 0.5, %v530_v37  ;;  %v569_v54 = vmul.f32 %v558_v49, %v537_v41 }
 0x147   : > { %v913_v43 = vpop.eup %912  ;;  %v535_v45 = vmul.f32 0.5, %v527_v38  ;;  %v528_v46 = vadd.f32 1.0, %v911_v39  ;;  %v566_v55 = vmul.f32 %v548_v32, %v534_v44 }
 0x148   : > { %v532_v48 = vadd.f32 1.0, %v913_v43  ;;  %v539_v52 = vmul.f32 0.5, %v531_v42  ;;  %v570_v60 = vmul.f32 %v558_v49, %v538_v50 }
 0x149   : > { %v567_v51 = vmul.f32 %v553_v40, %v535_v45  ;;  %v536_v53 = vmul.f32 0.5, %v528_v46 }
 0x14a   : > { %v540_v58 = vmul.f32 0.5, %v532_v48  ;;  %v571_v61 = vmul.f32 %v563_v59, %v539_v52 }
 0x14b   : > { %v573_v56 = vadd.f32 %v567_v51, %v565_v47  ;;  %v568_v57 = vmul.f32 %v553_v40, %v536_v53 }
 0x14c   : > { %v572_v3 = vmul.f32 %v563_v59, %v540_v58 }
 0x14d   : > { %v574_v62 = vadd.f32 %v573_v56, %v569_v54  ;;  %v582_v63 = vadd.f32 %v568_v57, %v566_v55 }
 0x14f   : > { %v575_v2 = vadd.f32 %v574_v62, %v571_v61  ;;  %v583_v4 = vadd.f32 %v582_v63, %v570_v60 }
 0x151   : > { %v576_v5 = vrot.slane %v575_v2, 4  ;;  %v584_v6 = vadd.f32 %v583_v4, %v572_v3 }
 0x153   : > { %v577_v0 = vadd.f32 %v576_v5, %v575_v2  ;;  %v585_v7 = vrot.slane %v584_v6, 4 }
 0x155   : > { %v578_v8 = vrot.slane %v577_v0, 2  ;;  %v586_v1 = vadd.f32 %v585_v7, %v584_v6 }
 0x157   : > { %v579_v9 = vadd.f32 %v578_v8, %v577_v0  ;;  %v587_v10 = vrot.slane %v586_v1, 2 }
 0x159   : > { %v580_v11 = vrot.slane %v579_v9, 1  ;;  %v588_v12 = vadd.f32 %v587_v10, %v586_v1 }
 0x15b   : > { %v581_v14 = vadd.f32 %v580_v11, %v579_v9  ;;  %v589_v15 = vrot.slane %v588_v12, 1 }
 0x15d   : > { %v593_v16 = vadd.f32 %v592_v13, %v581_v14  ;;  %v590_v17 = vadd.f32 %v589_v15, %v588_v12 }
 0x15f   : > { %v595_v18 = vmul.f32 1.442695, %v593_v16  ;;  %v594_v19 = vadd.f32 %v592_v13, %v590_v17 }
 0x161   : > { %914 = vpow2.f32 %v595_v18  ;;  %v597_v20 = vmul.f32 1.442695, %v594_v19 }
 0x163   : > { %916 = vpow2.f32 %v597_v20 }
 0x16b   : > { %v915_v26 = vpop.eup %914 }
 0x16d   : > { %v917_v28 = vpop.eup %916 }
 0x16e   : > { %v601_v29 = vcombine.low %v915_v26, %v917_v28  ;;  %629 = sbr.rel (!%p1056_p5) target bundleno = 400 (0x190), region = 44 }
 0x170   : > { %v608_v30 = vrot.slane %v601_v29, %v607_v27 }
 0x172   : > { %v615_v31 = vrot.slane %v608_v30, %v607_v27 }
 0x174   : > { %621 = vst.msk [vmem:[%s231_s7] sm:$0x3] %vm619_vm2, %v615_v31 }
 0x175   : > { %s1304_s10 = smov (!%p632_p11, %s631_s10), 2 }
 0x176   : > { %s1240_s11 = sshll.u32 %s1304_s10, 4 }
 0x177   : > { %s636_s12 = ssub.s32 32, %s1240_s11 }
 0x178   : > { %637 = vsyncadd %s1235_s8, %s636_s12  ;;  %p747_p12 = scmp.ne.s32.totalorder %s1240_s11, 0  ;;  %s1249_s29 = scalar_lea.hbm %s1294_s5, %s1067_s6 }
 0x179   : > { %s642_s15 = sshll.u32 %s231_s7, 4  ;;  %s984_s16 = smov [#allocation3]   ;;  %s643_s15 = int_to_ptr.vmem [resolvable:$true] %s642_s15 }
 0x17a   : > { %s918_s4 = scalar_lea.vmem %s643_s15, %s1240_s11  ;;  %s922_s17 = sshll.u32 %s984_s16, 4  ;;  %s923_s17 = int_to_ptr.vmem [resolvable:$false] %s922_s17 }
 0x17b   : > { %p919_p13 = scmp.ne.s32.totalorder %s643_s15, %s918_s4  ;;  %s924_s18 = scalar_lea.vmem %s923_s17, 64 }
 0x17c   : > { %p925_p2 = scmp.lt.s32.totalorder %s643_s15, %s923_s17  ;;  %p926_p3 = scmp.lt.s32.totalorder %s924_s18, %s918_s4 }
 0x17d   : > { %p920_p0 = pnand %p919_p13, %p747_p12 }
 0x17e   : > { %p927_p4 = por %p926_p3, %p925_p2 }
 0x17f   : > { %p921_p1 = pneg %p920_p0 }
 0x181   : > { %p928_p5 = pnand %p927_p4, %p921_p1 }
 0x183   : > { %931 = shalt.err (!%p928_p5)
}
 0x184   : > { %s932_s6 = scalar_lea.hbm %s1249_s29, %s1240_s11  ;;  %s936_s26 = scalar_lea.hbm %s1294_s5, 48 }
 0x185   : > { %p933_p7 = scmp.ne.s32.totalorder %s1249_s29, %s932_s6  ;;  %p937_p10 = scmp.lt.u32.totalorder %s1249_s29, %s1294_s5 }
 0x186   : > { %p938_p11 = scmp.lt.u32.totalorder %s936_s26, %s932_s6  ;;  %p940_p0 = scmp.lt.u32.totalorder %s932_s6, %s1249_s29 }
 0x187   : > { %p934_p8 = pnand %p933_p7, %p747_p12 }
 0x188   : > { %p939_p13 = por %p938_p11, %p937_p10 }
 0x189   : > { %p935_p9 = pneg %p934_p8 }
 0x18a   : > { %p941_p1 = por %p940_p0, %p939_p13 }
 0x18c   : > { %p942_p2 = pnand %p941_p1, %p935_p9 }
 0x18e   : > { %945 = shalt.err (!%p942_p2)
}
 0x18f   : > { %645 = dma.vmem_to_hbm [thread:$0]  (%p747_p12), %s643_s15, %s1240_s11, %s1249_s29, %s1235_s8  }
 0x190 PF: > { %p861_p3 = scmp.ge.s32.totalorder %s980_s23, 2  ;;  %s654_s9 = sand.u32 1, %s968_s20  }
 0x191   : > { %s655_s10 = scalar_lea.sflag [#allocation4], %s654_s9 }
 0x192   : > { %p858_p4 = pnand %p861_p3, %p1060_p6 }
 0x194   : > { %963 = dma.done.wait (!%p858_p4), %s655_s10, 32  }
 0x195   : > { %965 = vsyncadd (!%p858_p4), %s655_s10, 4294967264  ;;  %p16_p5 = scmp.ge.s32.totalorder %s1043_s25, 4   ;;  %s1299_s20 = smov %s972_s21 }
 0x196   : > { %s1300_s21 = smov %s976_s22  ;;  %s1301_s22 = smov %s1054_s28 }
 0x197   : > { %s1302_s23 = smov %s1043_s25  ;;  %18 = sbr.rel (!%p16_p5) target bundleno = 5 (0x5), region = 75 }
 0x19e   :  { %660 = vsyncpa [#allocation4], 1 }
 0x19f   :  { %662 = vsyncpa [#allocation4 + $0x1], 1 }

</bundles_post_ra>
